<compile_context>
chip_gen: v7x
topology: tpu7x:2x2x1
jax: 0.10.0
libtpu: 0.0.40
codegen_flags: <defaults>
</compile_context>

<pallas_src>
import math

import jax
import jax.numpy as jnp
from jax import lax
from jax.experimental import pallas as pl
from jax.experimental.pallas import tpu as pltpu


def _round_up(x, m):
    return (x + m - 1) // m * m


def _make_bigram_kernel(*, emit_logits, compute_loss, row_tile, bt_valid):
    """Build the fused (embed-gather + head matmul [+ cross-entropy]) kernel."""

    def kernel(idx_ref, pos_ref, tab_ref, wt_ref, b_ref, *rest):
        rest = list(rest)
        tgt_ref = rest.pop(0) if compute_loss else None
        logits_ref = rest.pop(0) if emit_logits else None
        loss_ref = rest.pop(0) if compute_loss else None

        tm = row_tile
        v = tab_ref.shape[0]

        # ---- fused token-embedding gather: one-hot @ table on the MXU ----
        col = lax.broadcasted_iota(jnp.int32, (tm, v), 1)                # (TM, V)
        onehot = jnp.where(col == idx_ref[...], 1.0, 0.0).astype(jnp.bfloat16)
        tok = jnp.dot(onehot, tab_ref[...],
                      preferred_element_type=jnp.float32)                # (TM, E) f32

        # tok + pos in f32 (v5e VPU has no bf16), then bf16 for the MXU.
        x = (tok + pos_ref[...]).astype(jnp.bfloat16)                    # (TM, E)

        # ---- linear head: x @ W^T + b, canonical (M,K)@(K,N) contraction ----
        logits = lax.dot_general(
            x, wt_ref[...], (((1,), (0,)), ((), ())),
            preferred_element_type=jnp.float32) + b_ref[...]             # (TM, V) f32

        if emit_logits:
            logits_ref[...] = logits.astype(logits_ref.dtype)

        if compute_loss:
            # per-row cross entropy: logsumexp(logits) - logits[target]
            m = jnp.max(logits, axis=-1, keepdims=True)                  # (TM, 1)
            lse = jnp.log(jnp.sum(jnp.exp(logits - m), axis=-1,
                                  keepdims=True)) + m
            tgt_logit = jnp.sum(jnp.where(tgt_ref[...] == col, logits, 0.0),
                                axis=-1, keepdims=True)                  # (TM, 1)
            per_row = lse - tgt_logit
            # zero padded rows in-kernel so the wrapper can sum the whole array
            grow = (pl.program_id(0) * tm
                    + lax.broadcasted_iota(jnp.int32, (tm, 1), 0))
            loss_ref[...] = jnp.where(grow < bt_valid, per_row, 0.0)

    return kernel


def bigram_forward(idx, targets, tok_table, pos_table, w, b, *,
                   row_tile=None, return_logits=True):
    """Pallas forward. Returns (logits (B,T,V) f32 or None, mean-CE loss or None).

    return_logits=False (with targets given) skips the logits HBM writeback
    entirely -- the fast training path. Inference (targets=None) always returns
    logits and skips the cross-entropy branch.
    """
    B, T = idx.shape
    V, E = tok_table.shape
    BT = B * T

    compute_loss = targets is not None
    emit_logits = return_logits or not compute_loss

    # Row tile: multiple of 8 (sublane) and of T (so the resident pos-embed tile
    # repeats cleanly). Mem-bound -> use big tiles; 1024 rows ~ roofline.
    align = math.lcm(8, T)
    if row_tile is None:
        row_tile = min(_round_up(1024, align), _round_up(BT, align))
    assert row_tile % align == 0
    bt_pad = _round_up(BT, row_tile)
    num_tiles = bt_pad // row_tile

    # Parameters: bf16 for the MXU operands, f32 for bias / pos (f32 add path).
    tab_bf16 = jnp.asarray(tok_table, jnp.bfloat16)                      # (V, E)
    wt_bf16 = jnp.asarray(w, jnp.bfloat16).T                             # (E, V)
    b_f32 = jnp.asarray(b, jnp.float32).reshape(1, V)
    pos_f32 = jnp.asarray(pos_table, jnp.float32)[:T]                    # (T, E)
    pos_rep = jnp.tile(pos_f32, (row_tile // T, 1))                      # (row_tile, E)

    idx_flat = idx.reshape(BT, 1).astype(jnp.int32)
    if bt_pad > BT:
        idx_flat = jnp.pad(idx_flat, ((0, bt_pad - BT), (0, 0)))

    inputs = [idx_flat, pos_rep, tab_bf16, wt_bf16, b_f32]
    in_specs = [
        pl.BlockSpec((row_tile, 1), lambda i: (i, 0)),   # token ids (tiled)
        pl.BlockSpec((row_tile, E), lambda i: (0, 0)),   # pos tile (resident)
        pl.BlockSpec((V, E), lambda i: (0, 0)),          # token table (resident)
        pl.BlockSpec((E, V), lambda i: (0, 0)),          # W^T (resident)
        pl.BlockSpec((1, V), lambda i: (0, 0)),          # bias (resident)
    ]
    if compute_loss:
        tgt_flat = targets.reshape(BT, 1).astype(jnp.int32)
        if bt_pad > BT:
            tgt_flat = jnp.pad(tgt_flat, ((0, bt_pad - BT), (0, 0)))
        inputs.append(tgt_flat)
        in_specs.append(pl.BlockSpec((row_tile, 1), lambda i: (i, 0)))

    out_shape = []
    out_specs = []
    if emit_logits:
        out_shape.append(jax.ShapeDtypeStruct((bt_pad, V), jnp.float32))
        out_specs.append(pl.BlockSpec((row_tile, V), lambda i: (i, 0)))  # lane-dense
    if compute_loss:
        out_shape.append(jax.ShapeDtypeStruct((bt_pad, 1), jnp.float32))
        out_specs.append(pl.BlockSpec((row_tile, 1), lambda i: (i, 0)))

    # Advisory cost estimate so XLA schedules the surrounding ops sensibly.
    flops = 2 * 2 * bt_pad * V * E                      # one-hot gather + head matmul
    transcendentals = bt_pad * V if compute_loss else 0
    bytes_accessed = (bt_pad * 4                        # token ids
                      + row_tile * E * 4 + V * E * 2 + E * V * 2 + V * 4  # residents
                      + (bt_pad * 4 if compute_loss else 0)               # targets
                      + (bt_pad * V * 4 if emit_logits else 0)            # logits out
                      + (bt_pad * 4 if compute_loss else 0))              # loss out

    kernel = _make_bigram_kernel(emit_logits=emit_logits,
                                 compute_loss=compute_loss,
                                 row_tile=row_tile, bt_valid=BT)

    outs = pl.pallas_call(
        kernel,
        out_shape=tuple(out_shape),
        grid=(num_tiles,),
        in_specs=in_specs,
        out_specs=tuple(out_specs),
        compiler_params=pltpu.CompilerParams(
            # Rows are embarrassingly parallel -> megacore sharding on v7x,
            # measured-neutral on v5e/v6e.
            dimension_semantics=("parallel",),
            vmem_limit_bytes=32 * 1024 * 1024,
        ),
        cost_estimate=pl.CostEstimate(flops=flops,
                                      transcendentals=transcendentals,
                                      bytes_accessed=bytes_accessed),
    )(*inputs)

    k = 0
    logits = None
    if emit_logits:
        logits = outs[k][:BT].reshape(B, T, V)
        k += 1
    loss = None
    if compute_loss:
        loss = jnp.sum(outs[k]) / BT                    # pad rows already zeroed
    return logits, loss


def bigram_forward_ref(idx, targets, tok_table, pos_table, w, b):
    """Pure-JAX f32 reference identical to the PyTorch forward."""
    B, T = idx.shape
    tok_emb = tok_table[idx]                       # (B, T, E)
    pos_emb = pos_table[jnp.arange(T)]             # (T, E)
    x = tok_emb + pos_emb[None, :, :]
    logits = jnp.einsum('bte,ve->btv', x, w) + b
    V = logits.shape[-1]
    lf = logits.reshape(B * T, V)
    tf = targets.reshape(-1)
    lse = jax.nn.logsumexp(lf, axis=-1)
    loss = jnp.mean(lse - lf[jnp.arange(B * T), tf])
    return logits, loss


if __name__ == "__main__":
    # small, lane-friendly config matching the module defaults
    vocab_size, num_embeds, block_size = 128, 64, 8
    B, T = 2, 8

    key = jax.random.PRNGKey(0)
    k1, k2, k3, k4, k5, k6 = jax.random.split(key, 6)

    tok_table = jax.random.normal(k1, (vocab_size, num_embeds), jnp.float32) * 0.02
    pos_table = jax.random.normal(k2, (block_size, num_embeds), jnp.float32) * 0.02
    w = jax.random.normal(k3, (vocab_size, num_embeds), jnp.float32) * 0.02  # torch Linear (out, in)
    b = jax.random.normal(k4, (vocab_size,), jnp.float32) * 0.02

    idx = jax.random.randint(k5, (B, T), 0, vocab_size, jnp.int32)
    targets = jax.random.randint(k6, (B, T), 0, vocab_size, jnp.int32)

    logits_ref, loss_ref = bigram_forward_ref(idx, targets, tok_table, pos_table, w, b)

    # bf16 matmul operands -> loosened tolerances vs. the f32 reference
    ATOL = RTOL = 5e-3

    # full path: logits + loss (module semantics)
    logits, loss = bigram_forward(idx, targets, tok_table, pos_table, w, b)
    jax.block_until_ready((logits, loss))
    assert logits.shape == (B, T, vocab_size)
    assert jnp.allclose(logits, logits_ref, atol=ATOL, rtol=RTOL)
    assert jnp.allclose(loss, loss_ref, atol=ATOL, rtol=RTOL)

    # loss-only fast training path (drops the logits HBM writeback)
    no_logits, loss_only = bigram_forward(idx, targets, tok_table, pos_table, w, b,
                                          return_logits=False)
    jax.block_until_ready(loss_only)
    assert no_logits is None
    assert jnp.allclose(loss_only, loss_ref, atol=ATOL, rtol=RTOL)

    # inference path (no targets -> no CE branch, no dummy targets stream)
    logits_inf, loss_none = bigram_forward(idx, None, tok_table, pos_table, w, b)
    jax.block_until_ready(logits_inf)
    assert loss_none is None
    assert jnp.allclose(logits_inf, logits_ref, atol=ATOL, rtol=RTOL)

    # multi-tile grid path (row_tile=8 -> 2 grid steps)
    logits2, loss2 = bigram_forward(idx, targets, tok_table, pos_table, w, b,
                                    row_tile=8)
    jax.block_until_ready((logits2, loss2))
    assert jnp.allclose(logits2, logits_ref, atol=ATOL, rtol=RTOL)
    assert jnp.allclose(loss2, loss_ref, atol=ATOL, rtol=RTOL)

    print("KERNEL_OK")
</pallas_src>

<mosaic_0001>
module attributes {stable_mosaic.version = 11 : i64} {
  func.func @kernel(%arg0: i32, %arg1: memref<16x1xi32, #tpu.memory_space<vmem>>, %arg2: memref<16x64xf32, #tpu.memory_space<vmem>>, %arg3: memref<128x64xbf16, #tpu.memory_space<vmem>>, %arg4: memref<64x128xbf16, #tpu.memory_space<vmem>>, %arg5: memref<1x128xf32, #tpu.memory_space<vmem>>, %arg6: memref<16x1xi32, #tpu.memory_space<vmem>>, %arg7: memref<16x128xf32, #tpu.memory_space<vmem>>, %arg8: memref<16x1xf32, #tpu.memory_space<vmem>>) attributes {dimension_semantics = [#tpu.dimension_semantics<parallel>], iteration_bounds = array<i64: 1>, scalar_prefetch = 0 : i64, scratch_operands = 0 : i64, tpu.core_type = #tpu.core_type<tc>, window_params = [{transform_indices = @transform_0, window_bounds = array<i64: 16, 1>}, {pipeline_mode = #tpu.pipeline_mode<synchronous>, transform_indices = @transform_1, window_bounds = array<i64: 16, 64>}, {pipeline_mode = #tpu.pipeline_mode<synchronous>, transform_indices = @transform_2, window_bounds = array<i64: 128, 64>}, {pipeline_mode = #tpu.pipeline_mode<synchronous>, transform_indices = @transform_3, window_bounds = array<i64: 64, 128>}, {pipeline_mode = #tpu.pipeline_mode<synchronous>, transform_indices = @transform_4, window_bounds = array<i64: 1, 128>}, {transform_indices = @transform_5, window_bounds = array<i64: 16, 1>}, {transform_indices = @transform_6, window_bounds = array<i64: 16, 128>}, {transform_indices = @transform_7, window_bounds = array<i64: 16, 1>}]} {
    %0 = tpu.iota {dimensions = array<i32: 1>} : vector<16x128xi32>
    %c0 = arith.constant 0 : index
    %c0_0 = arith.constant 0 : index
    %1 = vector.load %arg1[%c0, %c0_0] : memref<16x1xi32, #tpu.memory_space<vmem>>, vector<16x1xi32>
    %2 = vector.broadcast %1 : vector<16x1xi32> to vector<16x128xi32>
    %3 = arith.cmpi eq, %0, %2 : vector<16x128xi32>
    %cst = arith.constant 1.000000e+00 : f32
    %cst_1 = arith.constant 0.000000e+00 : f32
    %4 = vector.broadcast %cst : f32 to vector<16x128xf32>
    %5 = vector.broadcast %cst_1 : f32 to vector<16x128xf32>
    %6 = arith.select %3, %4, %5 : vector<16x128xi1>, vector<16x128xf32>
    %7 = arith.truncf %6 : vector<16x128xf32> to vector<16x128xbf16>
    %c0_2 = arith.constant 0 : index
    %c0_3 = arith.constant 0 : index
    %8 = vector.load %arg3[%c0_2, %c0_3] : memref<128x64xbf16, #tpu.memory_space<vmem>>, vector<128x64xbf16>
    %cst_4 = arith.constant dense<0.000000e+00> : vector<16x64xf32>
    %9 = tpu.matmul %7, %8, %cst_4 {dimension_numbers = #tpu.dot_dimension_numbers<[1], [0], [0], [1], [0, 0, 1, 1], [], []>} : vector<16x128xbf16>, vector<128x64xbf16>, vector<16x64xf32> -> vector<16x64xf32>
    %c0_5 = arith.constant 0 : index
    %c0_6 = arith.constant 0 : index
    %10 = vector.load %arg2[%c0_5, %c0_6] : memref<16x64xf32, #tpu.memory_space<vmem>>, vector<16x64xf32>
    %11 = arith.addf %9, %10 : vector<16x64xf32>
    %12 = arith.truncf %11 : vector<16x64xf32> to vector<16x64xbf16>
    %c0_7 = arith.constant 0 : index
    %c0_8 = arith.constant 0 : index
    %13 = vector.load %arg4[%c0_7, %c0_8] : memref<64x128xbf16, #tpu.memory_space<vmem>>, vector<64x128xbf16>
    %cst_9 = arith.constant dense<0.000000e+00> : vector<16x128xf32>
    %14 = tpu.matmul %12, %13, %cst_9 {dimension_numbers = #tpu.dot_dimension_numbers<[1], [0], [0], [1], [0, 0, 1, 1], [], []>} : vector<16x64xbf16>, vector<64x128xbf16>, vector<16x128xf32> -> vector<16x128xf32>
    %c0_10 = arith.constant 0 : index
    %c0_11 = arith.constant 0 : index
    %15 = vector.load %arg5[%c0_10, %c0_11] : memref<1x128xf32, #tpu.memory_space<vmem>>, vector<1x128xf32>
    %16 = vector.broadcast %15 : vector<1x128xf32> to vector<16x128xf32>
    %17 = arith.addf %14, %16 : vector<16x128xf32>
    %c0_12 = arith.constant 0 : index
    %c0_13 = arith.constant 0 : index
    %18 = vector.load %arg7[%c0_12, %c0_13] : memref<16x128xf32, #tpu.memory_space<vmem>>, vector<16x128xf32>
    tpu.vector_store %arg7[%c0_12, %c0_13], %17 {strides = array<i32>} : memref<16x128xf32, #tpu.memory_space<vmem>>, vector<16x128xf32>,
    %cst_14 = arith.constant dense<0xFF800000> : vector<16xf32>
    %19 = vector.multi_reduction <maximumf>, %17, %cst_14 [1] : vector<16x128xf32> to vector<16xf32>
    %20 = vector.shape_cast %19 : vector<16xf32> to vector<16x1xf32>
    %21 = vector.broadcast %20 : vector<16x1xf32> to vector<16x128xf32>
    %22 = arith.subf %17, %21 : vector<16x128xf32>
    %23 = math.exp %22 : vector<16x128xf32>
    %cst_15 = arith.constant dense<0.000000e+00> : vector<16xf32>
    %24 = vector.multi_reduction <add>, %23, %cst_15 [1] : vector<16x128xf32> to vector<16xf32>
    %25 = vector.shape_cast %24 : vector<16xf32> to vector<16x1xf32>
    %26 = math.log %25 : vector<16x1xf32>
    %27 = arith.addf %26, %20 : vector<16x1xf32>
    %c0_16 = arith.constant 0 : index
    %c0_17 = arith.constant 0 : index
    %28 = vector.load %arg6[%c0_16, %c0_17] : memref<16x1xi32, #tpu.memory_space<vmem>>, vector<16x1xi32>
    %29 = vector.broadcast %28 : vector<16x1xi32> to vector<16x128xi32>
    %30 = arith.cmpi eq, %29, %0 : vector<16x128xi32>
    %cst_18 = arith.constant 0.000000e+00 : f32
    %31 = vector.broadcast %cst_18 : f32 to vector<16x128xf32>
    %32 = arith.select %30, %17, %31 : vector<16x128xi1>, vector<16x128xf32>
    %cst_19 = arith.constant dense<0.000000e+00> : vector<16xf32>
    %33 = vector.multi_reduction <add>, %32, %cst_19 [1] : vector<16x128xf32> to vector<16xf32>
    %34 = vector.shape_cast %33 : vector<16xf32> to vector<16x1xf32>
    %35 = arith.subf %27, %34 : vector<16x1xf32>
    %c16_i32 = arith.constant 16 : i32
    %36 = arith.muli %arg0, %c16_i32 : i32
    %37 = tpu.iota {dimensions = array<i32: 0>} : vector<16x1xi32>
    %38 = vector.broadcast %36 : i32 to vector<16x1xi32>
    %39 = arith.addi %38, %37 : vector<16x1xi32>
    %c16_i32_20 = arith.constant 16 : i32
    %40 = vector.broadcast %c16_i32_20 : i32 to vector<16x1xi32>
    %41 = arith.cmpi slt, %39, %40 : vector<16x1xi32>
    %cst_21 = arith.constant 0.000000e+00 : f32
    %42 = vector.broadcast %cst_21 : f32 to vector<16x1xf32>
    %43 = arith.select %41, %35, %42 : vector<16x1xi1>, vector<16x1xf32>
    %c0_22 = arith.constant 0 : index
    %c0_23 = arith.constant 0 : index
    %44 = vector.load %arg8[%c0_22, %c0_23] : memref<16x1xf32, #tpu.memory_space<vmem>>, vector<16x1xf32>
    tpu.vector_store %arg8[%c0_22, %c0_23], %43 {strides = array<i32>} : memref<16x1xf32, #tpu.memory_space<vmem>>, vector<16x1xf32>,
    return
  }
  func.func @transform_0(%arg0: i32) -> (i32, i32) {
    %c0_i32 = arith.constant 0 : i32
    %c0_i32_0 = arith.constant 0 : i32
    return %arg0, %c0_i32 : i32, i32
  }
  func.func @transform_1(%arg0: i32) -> (i32, i32) {
    %c0_i32 = arith.constant 0 : i32
    %c0_i32_0 = arith.constant 0 : i32
    %c0_i32_1 = arith.constant 0 : i32
    return %c0_i32, %c0_i32_0 : i32, i32
  }
  func.func @transform_2(%arg0: i32) -> (i32, i32) {
    %c0_i32 = arith.constant 0 : i32
    %c0_i32_0 = arith.constant 0 : i32
    %c0_i32_1 = arith.constant 0 : i32
    return %c0_i32, %c0_i32_0 : i32, i32
  }
  func.func @transform_3(%arg0: i32) -> (i32, i32) {
    %c0_i32 = arith.constant 0 : i32
    %c0_i32_0 = arith.constant 0 : i32
    %c0_i32_1 = arith.constant 0 : i32
    return %c0_i32, %c0_i32_0 : i32, i32
  }
  func.func @transform_4(%arg0: i32) -> (i32, i32) {
    %c0_i32 = arith.constant 0 : i32
    %c0_i32_0 = arith.constant 0 : i32
    %c0_i32_1 = arith.constant 0 : i32
    return %c0_i32, %c0_i32_0 : i32, i32
  }
  func.func @transform_5(%arg0: i32) -> (i32, i32) {
    %c0_i32 = arith.constant 0 : i32
    %c0_i32_0 = arith.constant 0 : i32
    return %arg0, %c0_i32 : i32, i32
  }
  func.func @transform_6(%arg0: i32) -> (i32, i32) {
    %c0_i32 = arith.constant 0 : i32
    %c0_i32_0 = arith.constant 0 : i32
    return %arg0, %c0_i32 : i32, i32
  }
  func.func @transform_7(%arg0: i32) -> (i32, i32) {
    %c0_i32 = arith.constant 0 : i32
    %c0_i32_0 = arith.constant 0 : i32
    return %arg0, %c0_i32 : i32, i32
  }
}

</mosaic_0001>

<bundles_post_ra>
// kernel: tpu_custom_call.1
= control target key start
LH: loop header
LB: loop body
LE: loop exit
PB: predicated region body
PF: predicated region fallthrough
CT: control target
= control target key end

     0   :  { %v423_v1 = vmov 0   ;;  %v424_v2 = vmov 0.0   ;;  %vm425_vm0 = vmmov 0   ;;  %s545_s0 = inlined_call_operand.vmem [shape: s32[16,1], index: 0, kind: input, shape index: {}]   ;;  %s546_s1 = inlined_call_operand.vmem [shape: f32[16,64], index: 1, kind: input, shape index: {}]   ;;  %s547_s2 = inlined_call_operand.vmem [shape: bf16[128,64], index: 2, kind: input, shape index: {}]   ;;  %s548_s3 = inlined_call_operand.vmem [shape: bf16[64,128], index: 3, kind: input, shape index: {}]   ;;  %s549_s4 = inlined_call_operand.vmem [shape: f32[1,128], index: 4, kind: input, shape index: {}]   ;;  %s550_s5 = inlined_call_operand.vmem [shape: s32[16,1], index: 5, kind: input, shape index: {}]   ;;  %s551_s6 = inlined_call_operand.hbm [shape: f32[16,128], index: 6, kind: output, shape index: {0}]   ;;  %s552_s7 = inlined_call_operand.vmem [shape: f32[16,1], index: 7, kind: output, shape index: {1}]  }
   0x1   :  { %v29_v0 = vld [vmem:[%s545_s0] sm:$0xff]  ;;  %377 = vset.pattern.permute.xlu0 %v423_v1  ;;  %338 = vmatprep.subr.bf16.mxu0 %v424_v2  ;;  %v30_v4 = vld [vmem:[%s545_s0 + $0x8] sm:$0xff]  ;;  %v381_v7 = vld [vmem:[%s547_s2 + $0x10] sm:$0xff]  }
   0x2   :  { %v379_v3 = vld [vmem:[%s547_s2] sm:$0xff]   ;;  %32 = vperm.xlu0 %377, %v29_v0   ;;  %358 = vmatprep.subr.bf16.mxu1 %v424_v2  ;;  %v380_v5 = vld [vmem:[%s547_s2 + $0x8] sm:$0xff]   ;;  %v382_v9 = vld [vmem:[%s547_s2 + $0x18] sm:$0xff]  }
   0x3   :  { %339 = vmatpush3.bf16.msra.mxu0 %v379_v3  ;;  %378 = vset.pattern.permute.xlu1 %v423_v1  ;;  %v256_v6 = vld [vmem:[%s550_s5] sm:$0xff]  ;;  %v388_v10 = vld [vmem:[%s548_s3 + $0x8] sm:$0xff]  }
   0x4   :  { %340 = vmatprep.subr.bf16.mxu0 %v424_v2  ;;  %354 = vmatprep.mubr.msk.bf16.mxu0 %vm425_vm0, %v424_v2  ;;  %v387_v8 = vld [vmem:[%s548_s3] sm:$0xff]  }
   0x5   :  { %366 = vmatprep.mubr.msk.bf16.mxu1 %vm425_vm0, %v424_v2  ;;  %359 = vmatpush3.bf16.msra.mxu1 %v387_v8 }
   0x6   :  { %35 = vperm.xlu0 %377, %v30_v4   ;;  %360 = vmatprep.subr.bf16.mxu1 %v424_v2 }
   0x7   :  { %341 = vmatpush3.bf16.msra.mxu0 %v380_v5 }
   0x8   :  { %342 = vmatprep.subr.bf16.mxu0 %v424_v2 }
   0xa   :  { %259 = vperm.xlu0 %377, %v256_v6  }
   0xb   :  { %343 = vmatpush3.bf16.msra.mxu0 %v381_v7 }
   0xc   :  { %344 = vmatprep.subr.bf16.mxu0 %v424_v2 }
   0xd   :  { %13 = vsyncpa [#allocation3], 0  ;;  %v383_v11 = vld [vmem:[%s547_s2 + $0x20] sm:$0xff]   ;;  %361 = vmatpush3.bf16.msra.mxu1 %v388_v10  ;;  %v384_v12 = vld [vmem:[%s547_s2 + $0x28] sm:$0xff]   ;;  %v27_v15 = vlaneseq  ;;  %v426_v19 = vmov 1.0|1.0  }
   0xe   :  { %362 = vmatprep.subr.bf16.mxu1 %v424_v2  ;;  %v385_v13 = vld [vmem:[%s547_s2 + $0x30] sm:$0xff]   ;;  %v386_v14 = vld [vmem:[%s547_s2 + $0x38] sm:$0xff]   ;;  %v58_v22 = vld [vmem:[%s546_s1] sm:$0xff]  ;;  %vm189_vm4 = vcmask 523264  }
   0xf   :  { %345 = vmatpush3.bf16.msra.mxu0 %v382_v9  ;;  %v28_v17 = vand.u32 127, %v27_v15  ;;  %v389_v20 = vld [vmem:[%s548_s3 + $0x10] sm:$0xff]   ;;  %v390_v21 = vld [vmem:[%s548_s3 + $0x18] sm:$0xff]   ;;  %v59_v24 = vld [vmem:[%s546_s1 + $0x8] sm:$0xff] }
  0x10   :  { %346 = vmatprep.subr.bf16.mxu0 %v424_v2  ;;  %v318_v31 = vld [vmem:[%s549_s4] ss:$0 sm:$0xff]  ;;  %v257_v38 = vld [vmem:[%s550_s5 + $0x8] sm:$0xff]  ;;  %s427_s4 = smov [#allocation2]  }
  0x11   :  { %363 = vmatpush3.bf16.msra.mxu1 %v389_v20  ;;  %s293_s5 = sshll.u32 %s427_s4, 4  ;;  %s294_s5 = int_to_ptr.vmem [resolvable:$true] %s293_s5 }
  0x12   :  { %364 = vmatprep.subr.bf16.mxu1 %v424_v2  ;;  %s399_s12 = scalar_lea.vmem %s294_s5, 256  ;;  %p404_p1 = scmp.lt.s32.totalorder %s294_s5, %s294_s5 }
  0x13   :  { %347 = vmatpush3.bf16.msra.mxu0 %v383_v11  ;;  %p400_p0 = scmp.ne.s32.totalorder %s294_s5, %s399_s12  ;;  %p405_p2 = scmp.lt.s32.totalorder %s399_s12, %s399_s12 }
  0x14   :  { %348 = vmatprep.subr.bf16.mxu0 %v424_v2 }
  0x15   :  { %365 = vmatpush3.bf16.msra.mxu1 %v390_v21  ;;  %p406_p3 = por %p405_p2, %p404_p1 }
  0x17   :  { %349 = vmatpush3.bf16.msra.mxu0 %v384_v12  ;;  %p407_p4 = pnand %p406_p3, %p400_p0 }
  0x18   :  { %350 = vmatprep.subr.bf16.mxu0 %v424_v2 }
  0x1b   :  { %351 = vmatpush3.bf16.msra.mxu0 %v385_v13 }
  0x1c   :  { %352 = vmatprep.subr.bf16.mxu0 %v424_v2 }
  0x1f   :  { %353 = vmatpush3.bf16.msra.mxu0 %v386_v14 }
  0x81   :  { %v33_v16 = vpop.permute.xlu0 %32 }
  0x82   :  { %vm37_vm1 = vcmp.eq.s32.totalorder %v28_v17, %v33_v16 }
  0x85   :  { %v36_v18 = vpop.permute.xlu0 %35 }
  0x86   :  { %vm38_vm2 = vcmp.eq.s32.totalorder %v28_v17, %v36_v18 }
  0x87   :  { %vm316_vm3 = vmpackc.low %vm38_vm2, %vm37_vm1 }
  0x88   :  { %355 = vmatmul.mubr.msk.bf16.vlgmr.msra.gmra.mrb[0].mxu0 %vm316_vm3, %v426_v19 }
  0x89   :  { %v260_v46 = vpop.permute.xlu0 %259 }
  0x8a   :  { %vm264_vm5 = vcmp.eq.s32.totalorder %v260_v46, %v28_v17 }
 0x15b   :  { %v142_v23 = vpop.f32.mrb[0].mxu0 }
 0x15c   :  { %v356_v25 = vpop.f32.mrb[1].mxu0  ;;  %v143_v27 = vadd.f32 %v142_v23, %v58_v22 }
 0x15d   :  { %v145_v26 = vpop.f32.mrb[2].mxu0 }
 0x15e   :  { %v146_v28 = vadd.f32 %v145_v26, %v59_v24  ;;  %v357_v29 = vpop.f32.mrb[3].mxu0 }
 0x160   :  { %v149_v30 = vpack.c.bf16 %v146_v28, %v143_v27 }
 0x162   :  { %367 = vmatmul.mubr.msk.bf16.vlgmr.msra.gmra.mrb[0].mxu1 %vm189_vm4, %v149_v30 }
 0x235   :  { %v227_v32 = vpop.f32.mrb[0].mxu1 }
 0x236   :  { %v228_v33 = vadd.f32 %v318_v31, %v227_v32  ;;  %v368_v34 = vpop.f32.mrb[1].mxu1 }
 0x237   :  { %v230_v35 = vpop.f32.mrb[2].mxu1 }
 0x238   :  { %234 = vst [vmem:[#allocation2] sm:$0xff] %v228_v33  ;;  %v231_v36 = vadd.f32 %v318_v31, %v230_v35  ;;  %236 = vmax.xlane.f32.xlu1 %v228_v33  ;;  %v369_v37 = vpop.f32.mrb[3].mxu1  ;;  %v266_v49 = vsel %vm264_vm5, %v228_v33, 0.0 }
 0x23a   :  { %235 = vst [vmem:[#allocation2 + $0x8] sm:$0xff] %v231_v36 }
 0x23c   :  { %238 = vmax.xlane.f32.xlu1 %v231_v36 }
 0x24d   :  { %262 = vperm.xlu1 %378, %v257_v38  }
 0x2c5   :  { %v237_v39 = vpop.xlane.xlu1 %236 }
 0x2c6   :  { %v240_v40 = vsub.f32 %v228_v33, %v237_v39 }
 0x2c8   :  { %v242_v41 = vmul.f32 1.442695, %v240_v40 }
 0x2c9   :  { %v239_v42 = vpop.xlane.xlu1 %238 }
 0x2ca   :  { %391 = vpow2.f32 %v242_v41  ;;  %v241_v43 = vsub.f32 %v231_v36, %v239_v42 }
 0x2cc   :  { %v244_v44 = vmul.f32 1.442695, %v241_v43 }
 0x2cd   :  { %v263_v47 = vpop.permute.xlu1 %262 }
 0x2ce   :  { %393 = vpow2.f32 %v244_v44  ;;  %vm265_vm6 = vcmp.eq.s32.totalorder %v263_v47, %v28_v17 }
 0x2cf   :  { %v267_v50 = vsel %vm265_vm6, %v231_v36, 0.0 }
 0x2d4   :  { %v392_v45 = vpop.eup %391 }
 0x2d5   :  { %246 = vadd.xlane.f32.xlu0 %v392_v45 }
 0x2d8   :  { %v394_v48 = vpop.eup %393 }
 0x2d9   :  { %268 = vadd.xlane.f32.xlu0 %v266_v49  ;;  %248 = vadd.xlane.f32.xlu1 %v394_v48 }
 0x2dd   :  { %270 = vadd.xlane.f32.xlu0 %v267_v50 }
 0x2de   :  { %410 = shalt.err (!%p407_p4)
}
 0x2df   :  { %s411_s14 = scalar_lea.hbm %s551_s6, 256 }
 0x2e0   :  { %p412_p5 = scmp.ne.s32.totalorder %s551_s6, %s411_s14  ;;  %p415_p6 = scmp.lt.u32.totalorder %s411_s14, %s551_s6 }
 0x2e2   :  { %p417_p7 = pnand %p415_p6, %p412_p5 }
 0x2e4   :  { %420 = shalt.err (!%p417_p7)
}
 0x2e5   :  { %s428_s19 = smov 128   ;;  %s429_s20 = smov 8   ;;  %vm285_vm7 = vcmask 7168  }
 0x2e6   :  { %299 = dma.vmem_to_hbm [thread:$0]  %s294_s5, 256, %s551_s6, [#allocation3], %s428_s19, %s428_s19, %s429_s20  }
 0x362   :  { %v247_v51 = vpop.xlane.xlu0 %246 }
 0x363   :  { %395 = vlog2.f32 %v247_v51 }
 0x366   :  { %v249_v52 = vpop.xlane.xlu1 %248  ;;  %v269_v55 = vpop.xlane.xlu0 %268 }
 0x367   :  { %397 = vlog2.f32 %v249_v52 }
 0x36a   :  { %v271_v61 = vpop.xlane.xlu0 %270 }
 0x36d   :  { %v396_v53 = vpop.eup %395 }
 0x36e   :  { %v251_v54 = vmul.f32 0.6931472, %v396_v53 }
 0x370   :  { %v254_v56 = vadd.f32 %v251_v54, %v237_v39 }
 0x371   :  { %v398_v57 = vpop.eup %397 }
 0x372   :  { %v272_v58 = vsub.f32 %v254_v56, %v269_v55  ;;  %v253_v59 = vmul.f32 0.6931472, %v398_v57 }
 0x374   :  { %286 = vst.msk [vmem:[%s552_s7] sm:$0xff] %vm285_vm7, %v272_v58  ;;  %v255_v60 = vadd.f32 %v253_v59, %v239_v42 }
 0x376   :  { %v273_v62 = vsub.f32 %v255_v60, %v271_v61 }
 0x378   :  { %287 = vst.msk [vmem:[%s552_s7 + $0x8] sm:$0xff] %vm285_vm7, %v273_v62 }
 0x379   :  { %421 = dma.done.wait [#allocation3], 256  }
 0x37a   :  { %422 = vsyncadd [#allocation3], 4294967040 }
 0x37b   :  { %307 = vsyncpa [#allocation3], 1 }

</bundles_post_ra>
